<compile_context>
chip_gen: v5e
topology: v5e:2x2
jax: 0.10.0
libtpu: 0.0.40
codegen_flags: <defaults>
</compile_context>

<pallas_src>
import jax
import jax.numpy as jnp
from jax.experimental import pallas as pl
from jax.experimental.pallas import tpu as pltpu


_TARGET_BLOCK_BYTES = 4 * 1024 * 1024   # ~4 MiB per block
_LANE_CANDIDATES = (1024, 512, 256, 128)


def _hswish_kernel(x_ref, o_ref):
    x = x_ref[...]
    xf = x.astype(jnp.float32)             # no-op for f32 input
    r6 = jnp.clip(xf + 3.0, 0.0, 6.0)      # relu6(x + 3)
    o_ref[...] = (xf * r6 * (1.0 / 6.0)).astype(o_ref.dtype)


def _round_up(a, m):
    return ((a + m - 1) // m) * m


def hswish(x, donate_input=False):
    """H-Swish on an arbitrary-shape tensor (NCHW in the reference model)."""
    orig_shape = x.shape
    total = x.size
    if total == 0:
        return x

    dtype = x.dtype
    itemsize = jnp.dtype(dtype).itemsize

    # Widest lane count (multiple of 128) that divides the element count.
    lanes = None
    for cand in _LANE_CANDIDATES:
        if total % cand == 0:
            lanes = cand
            break

    flat = x.reshape(-1)
    if lanes is None:
        # Rare fallback: element count not a multiple of 128 -> minimal pad.
        lanes = 128
        padded_total = _round_up(total, lanes)
        flat = jnp.pad(flat, (0, padded_total - total))
    else:
        padded_total = total

    rows = padded_total // lanes
    x2d = flat.reshape(rows, lanes)

    # Row tile: ~4 MiB per block, multiple of 8 rows.
    row_tile = max(8, (_TARGET_BLOCK_BYTES // (lanes * itemsize)) // 8 * 8)
    if rows <= row_tile:
        if rows >= 16:
            # Split small tensors into >=2 blocks so both v7x TCs get work
            # (harmless on single-TC v5e/v6e).
            row_tile = _round_up(pl.cdiv(rows, 2), 8)
        else:
            # Full-extent block (legal even when rows is not a multiple of 8).
            row_tile = rows

    grid = (pl.cdiv(rows, row_tile),)   # ragged edge block is masked by Pallas

    out2d = pl.pallas_call(
        _hswish_kernel,
        out_shape=jax.ShapeDtypeStruct((rows, lanes), dtype),
        grid=grid,
        in_specs=[pl.BlockSpec((row_tile, lanes), lambda i: (i, 0))],
        out_specs=pl.BlockSpec((row_tile, lanes), lambda i: (i, 0)),
        compiler_params=pltpu.CompilerParams(
            dimension_semantics=("parallel",),
            vmem_limit_bytes=32 * 1024 * 1024,
        ),
        cost_estimate=pl.CostEstimate(
            flops=4 * padded_total,
            transcendentals=0,
            bytes_accessed=2 * padded_total * itemsize,
        ),
        input_output_aliases={0: 0} if donate_input else {},
    )(x2d)

    out = out2d.reshape(-1)
    if padded_total != total:
        out = out[:total]
    return out.reshape(orig_shape)


def hswish_ref(x):
    return x * jnp.clip(x + 3.0, 0.0, 6.0) / 6.0


if __name__ == "__main__":
    key = jax.random.PRNGKey(0)

    # 1) NCHW activation consistent with the module: batch=2, C=4, H=W=16.
    x = jax.random.normal(key, (2, 4, 16, 16), dtype=jnp.float32) * 3.0
    y = jax.block_until_ready(hswish(x))
    assert y.shape == x.shape and y.dtype == x.dtype
    assert jnp.allclose(y, hswish_ref(x), atol=1e-6, rtol=1e-6)

    # 2) Larger map exercising the multi-block / partial-edge-block path.
    k1, k2 = jax.random.split(key)
    x2 = jax.random.normal(k1, (2, 64, 56, 56), dtype=jnp.float32) * 3.0
    y2 = jax.block_until_ready(hswish(x2))
    assert jnp.allclose(y2, hswish_ref(x2), atol=1e-6, rtol=1e-6)

    # 3) Ragged size (not a multiple of 128) exercising the pad fallback.
    x3 = jax.random.normal(k2, (3, 5, 7, 11), dtype=jnp.float32) * 3.0
    y3 = jax.block_until_ready(hswish(x3))
    assert y3.shape == x3.shape
    assert jnp.allclose(y3, hswish_ref(x3), atol=1e-6, rtol=1e-6)

    print("KERNEL_OK")
</pallas_src>

<mosaic_0001>
module attributes {stable_mosaic.version = 11 : i64} {
  func.func @_hswish_kernel(%arg0: i32, %arg1: memref<2x1024xf32, #tpu.memory_space<vmem>>, %arg2: memref<2x1024xf32, #tpu.memory_space<vmem>>) attributes {dimension_semantics = [#tpu.dimension_semantics<parallel>], iteration_bounds = array<i64: 1>, scalar_prefetch = 0 : i64, scratch_operands = 0 : i64, tpu.core_type = #tpu.core_type<tc>, window_params = [{transform_indices = @transform_0, window_bounds = array<i64: 2, 1024>}, {transform_indices = @transform_1, window_bounds = array<i64: 2, 1024>}]} {
    %c0 = arith.constant 0 : index
    %c0_0 = arith.constant 0 : index
    %0 = vector.load %arg1[%c0, %c0_0] : memref<2x1024xf32, #tpu.memory_space<vmem>>, vector<2x1024xf32>
    %cst = arith.constant 3.000000e+00 : f32
    %1 = vector.broadcast %cst : f32 to vector<2x1024xf32>
    %2 = arith.addf %0, %1 : vector<2x1024xf32>
    %cst_1 = arith.constant 0.000000e+00 : f32
    %cst_2 = arith.constant 6.000000e+00 : f32
    %3 = vector.broadcast %cst_1 : f32 to vector<2x1024xf32>
    %4 = arith.maximumf %3, %2 : vector<2x1024xf32>
    %5 = vector.broadcast %cst_2 : f32 to vector<2x1024xf32>
    %6 = arith.minimumf %5, %4 : vector<2x1024xf32>
    %7 = arith.mulf %0, %6 : vector<2x1024xf32>
    %cst_3 = arith.constant 0.166666672 : f32
    %8 = vector.broadcast %cst_3 : f32 to vector<2x1024xf32>
    %9 = arith.mulf %7, %8 : vector<2x1024xf32>
    %c0_4 = arith.constant 0 : index
    %c0_5 = arith.constant 0 : index
    %10 = vector.load %arg2[%c0_4, %c0_5] : memref<2x1024xf32, #tpu.memory_space<vmem>>, vector<2x1024xf32>
    tpu.vector_store %arg2[%c0_4, %c0_5], %9 {strides = array<i32>} : memref<2x1024xf32, #tpu.memory_space<vmem>>, vector<2x1024xf32>,
    return
  }
  func.func @transform_0(%arg0: i32) -> (i32, i32) {
    %c0_i32 = arith.constant 0 : i32
    %c0_i32_0 = arith.constant 0 : i32
    return %arg0, %c0_i32 : i32, i32
  }
  func.func @transform_1(%arg0: i32) -> (i32, i32) {
    %c0_i32 = arith.constant 0 : i32
    %c0_i32_0 = arith.constant 0 : i32
    return %arg0, %c0_i32 : i32, i32
  }
}

</mosaic_0001>

<bundles_post_ra>
// kernel: tpu_custom_call.1
= control target key start
LH: loop header
LB: loop body
LE: loop exit
PB: predicated region body
PF: predicated region fallthrough
CT: control target
= control target key end

     0   :  { %6 = vsyncpa [#allocation3], 0  ;;  %s126_s0 = inlined_call_operand.hbm [shape: f32[2,1024], index: 0, kind: input, shape index: {}]   ;;  %s127_s1 = inlined_call_operand.hbm [shape: f32[2,1024], index: 1, kind: output, shape index: {}]  }
   0x1   :  { %7 = vsyncpa [#allocation4], 0  ;;  %s13_s8 = sshll.u32 %s126_s0, 4  ;;  %s108_s9 = smov [#allocation2]   ;;  %s14_s8 = int_to_ptr.hbm [resolvable:$true] %s13_s8 }
   0x2   :  { %s15_s10 = sshll.u32 %s108_s9, 4  ;;  %s16_s10 = int_to_ptr.vmem [resolvable:$true] %s15_s10 }
   0x3   :  { %18 = dma.hbm_to_vmem [thread:$0]  %s14_s8, 256, %s16_s10, [#allocation3]  }
   0x4   :  { %104 = dma.done.wait [#allocation3], 256  }
   0x5   :  { %105 = vsyncadd [#allocation3], 4294967040  ;;  %v23_v0 = vld [vmem:[#allocation2] sm:$0xff]  ;;  %v24_v1 = vld [vmem:[#allocation2 + $0x8] sm:$0xff]  ;;  %s109_s11 = smov [#allocation5]   ;;  %s44_s14 = sshll.u32 %s127_s1, 4  ;;  %s45_s14 = int_to_ptr.hbm [resolvable:$true] %s44_s14 }
   0x6   :  { %v25_v2 = vadd.f32 3.0, %v23_v0  ;;  %v26_v3 = vadd.f32 3.0, %v24_v1  ;;  %s42_s12 = sshll.u32 %s109_s11, 4  ;;  %s43_s12 = int_to_ptr.vmem [resolvable:$true] %s42_s12 }
   0x8   :  { %v27_v4 = vmax.f32 %v25_v2, 0.0  ;;  %v28_v5 = vmax.f32 %v26_v3, 0.0 }
   0xa   :  { %v29_v6 = vmin.f32 %v27_v4, 6.0  ;;  %v30_v7 = vmin.f32 %v28_v5, 6.0 }
   0xc   :  { %v31_v8 = vmul.f32 %v29_v6, %v23_v0  ;;  %v32_v9 = vmul.f32 %v30_v7, %v24_v1 }
   0xe   :  { %v33_v10 = vmul.f32 0.16666667, %v31_v8  ;;  %v34_v11 = vmul.f32 0.16666667, %v32_v9 }
  0x10   :  { %35 = vst [vmem:[#allocation5] sm:$0xff] %v33_v10 }
  0x11   :  { %36 = vst [vmem:[#allocation5 + $0x8] sm:$0xff] %v34_v11 }
  0x12   :  { %47 = dma.vmem_to_hbm [thread:$0]  %s43_s12, 256, %s45_s14, [#allocation4]  }
  0x13   :  { %106 = dma.done.wait [#allocation4], 256  }
  0x14   :  { %107 = vsyncadd [#allocation4], 4294967040 }
  0x15   :  { %52 = vsyncpa [#allocation3], 1 }
  0x16   :  { %53 = vsyncpa [#allocation4], 1 }

</bundles_post_ra>
